<compile_context>
chip_gen: v6e
topology: v6e:2x2x1
jax: 0.10.0
libtpu: 0.0.40
codegen_flags: <defaults>
</compile_context>

<pallas_src>
import jax
import jax.numpy as jnp
from jax.experimental import pallas as pl
from jax.experimental.pallas import tpu as pltpu


def _round_up(x, m):
    return ((x + m - 1) // m) * m


# --------------------------------------------------------------------------
# Kernel
# --------------------------------------------------------------------------
def _last_layer_kernel(x_ref, shift_ref, scale1p_ref, wlin_ref, blin_ref, o_ref):
    # x_ref:       (TQ, H)      activations (input dtype)
    # shift_ref:   (1, H)       adaLN shift (f32, precomputed in wrapper)
    # scale1p_ref: (1, H)       1 + adaLN scale (f32, precomputed in wrapper)
    # wlin_ref:    (H, O_pad)   projection weight, transposed + lane-padded
    # blin_ref:    (1, O_pad)   projection bias (f32, lane-padded)
    # o_ref:       (TQ, O)      un-padded output block
    x = x_ref[...].astype(jnp.float32)                       # (TQ, H)
    h_inv = 1.0 / x.shape[-1]

    # Single-pass LayerNorm statistics (sum and sum-of-squares together).
    mean = jnp.sum(x, axis=-1, keepdims=True) * h_inv        # (TQ, 1)
    var = jnp.sum(x * x, axis=-1, keepdims=True) * h_inv - mean * mean
    rstd = jax.lax.rsqrt(var + 1e-6)                         # (TQ, 1)

    # Fused LN + modulate:  y = x*A + B,
    #   A = (1+scale)*rstd  (rank-1: (TQ,1) x (1,H)),  B = shift - mean*A.
    a = scale1p_ref[...] * rstd                              # (TQ, H)
    b = shift_ref[...] - mean * a                            # (TQ, H)
    xm = x * a + b

    # Output projection on the MXU in the weight dtype, f32 accumulation.
    out = jnp.dot(xm.astype(wlin_ref.dtype), wlin_ref[...],
                  preferred_element_type=jnp.float32)
    out = out + blin_ref[...]

    # Store only the O valid columns -> no padded HBM write, no post-slice.
    o_ref[...] = out[:, : o_ref.shape[-1]].astype(o_ref.dtype)


# --------------------------------------------------------------------------
# Parameter prep (hoist out of the forward pass in production)
# --------------------------------------------------------------------------
def prepare_last_layer_params(w_lin, b_lin):
    """One-time prep: transpose + lane-pad the output projection weight/bias."""
    O, H = w_lin.shape
    o_pad = _round_up(O, 128)
    w_lin_t = jnp.zeros((H, o_pad), w_lin.dtype).at[:, :O].set(w_lin.T)
    b_lin_p = jnp.zeros((1, o_pad), jnp.float32).at[:, :O].set(
        b_lin.astype(jnp.float32))
    return w_lin_t, b_lin_p


# --------------------------------------------------------------------------
# Tile / VMEM sizing
# --------------------------------------------------------------------------
def _vmem_capacity_bytes():
    try:
        info = pltpu.get_tpu_info()
        for attr in ("vmem_capacity_bytes", "vmem_size_bytes", "vmem_bytes"):
            v = getattr(info, attr, None)
            if v:
                return int(v)
    except Exception:
        pass
    return 64 * 1024 * 1024  # conservative: v7x per-TensorCore VMEM


def _auto_tq(T, H, o_pad, x_bytes, w_bytes, out_bytes, budget_bytes):
    """Largest tile (capped at 512) whose per-step footprint fits the budget:
    x double-buffer + ~3 (tq,H) f32 LN temporaries + output double-buffer,
    plus the resident weight/bias."""
    fixed = H * o_pad * w_bytes + 4 * o_pad * 4 + 8 * H * 4
    tq = 8
    for cand in (512, 256, 128, 64, 32, 16, 8):   # 512 first: ~85% of HBM roofline
        per_step = cand * H * (2 * x_bytes + 3 * 4) + 2 * cand * o_pad * out_bytes
        if fixed + per_step <= budget_bytes:
            tq = cand
            break
    t8 = _round_up(T, 8)
    if t8 <= tq:
        return t8
    # Prefer an exact divisor of T (multiple of 8) -> no masked tail block.
    for d in range(tq, 7, -8):
        if T % d == 0:
            return d
    return tq  # no divisor: cdiv grid with a masked tail block


# --------------------------------------------------------------------------
# Forward
# --------------------------------------------------------------------------
def last_layer(x, vec, w_mod, b_mod, w_lin, b_lin, *,
               prepared=None, tq=None, vmem_limit_bytes=None):
    """x: (B, T, H), vec: (B, H).
    w_mod: (2H, H) torch-layout, b_mod: (2H,)
    w_lin: (O, H)  torch-layout, b_lin: (O,)
    prepared: optional result of prepare_last_layer_params(w_lin, b_lin).
    Returns (B, T, O)."""
    B, T, H = x.shape
    O = w_lin.shape[0]

    # ---- adaLN modulation hoisted out of the kernel (plain XLA GEMM) ----
    vec32 = vec.astype(jnp.float32)
    sv = vec32 * jax.nn.sigmoid(vec32)                        # SiLU
    mod = jnp.dot(sv, w_mod.T.astype(jnp.float32),
                  preferred_element_type=jnp.float32) + b_mod.astype(jnp.float32)
    shift = mod[:, :H].reshape(B, 1, H)                       # (B,1,H) f32
    scale1p = (1.0 + mod[:, H:]).reshape(B, 1, H)             # (B,1,H) f32

    # ---- projection weight prep (hoist via `prepared` in production) ----
    if prepared is None:
        prepared = prepare_last_layer_params(w_lin, b_lin)
    w_lin_t, b_lin_p = prepared
    o_pad = w_lin_t.shape[1]

    # ---- VMEM-budgeted tile selection (budget is per-TensorCore) ----
    vmem_cap = _vmem_capacity_bytes()
    budget = min(vmem_cap // 2, 40 * 1024 * 1024)
    if vmem_limit_bytes is None:
        vmem_limit_bytes = min(budget + 8 * 1024 * 1024, vmem_cap)
    if tq is None:
        tq = _auto_tq(T, H, o_pad, x.dtype.itemsize,
                      w_lin_t.dtype.itemsize, x.dtype.itemsize, budget)
    tq = max(8, _round_up(tq, 8))

    num_t = pl.cdiv(T, tq)
    # Megacore balance (v7x has 2 TCs): keep total step count even and >= 2.
    while (B * num_t < 2 or (B * num_t) % 2 == 1) and tq > 8:
        tq = max(8, _round_up(tq // 2, 8))
        num_t = pl.cdiv(T, tq)
    grid = (B, num_t)

    def build(single_buffer_consts):
        const_kw = dict(pipeline_mode=pl.Buffered(1)) if single_buffer_consts else {}
        grid_spec = pltpu.PrefetchScalarGridSpec(
            num_scalar_prefetch=0,
            grid=grid,
            in_specs=[
                # x: batch dim squeezed, (TQ, H) slab streamed per grid step
                pl.BlockSpec((None, tq, H), lambda b, t: (b, t, 0)),
                pl.BlockSpec((None, 1, H), lambda b, t: (b, 0, 0)),      # shift
                pl.BlockSpec((None, 1, H), lambda b, t: (b, 0, 0)),      # 1+scale
                pl.BlockSpec((H, o_pad), lambda b, t: (0, 0), **const_kw),  # W^T
                pl.BlockSpec((1, o_pad), lambda b, t: (0, 0), **const_kw),  # bias
            ],
            # Un-padded (TQ, O) output block: contiguous in HBM, no post-slice.
            out_specs=pl.BlockSpec((None, tq, O), lambda b, t: (b, t, 0)),
        )
        return pl.pallas_call(
            _last_layer_kernel,
            out_shape=jax.ShapeDtypeStruct((B, T, O), x.dtype),
            grid_spec=grid_spec,
            compiler_params=pltpu.CompilerParams(
                dimension_semantics=("parallel", "parallel"),
                vmem_limit_bytes=int(vmem_limit_bytes),
            ),
        )

    args = (x, shift, scale1p, w_lin_t, b_lin_p)
    try:
        # Constant-index weight/bias kept single-buffered (no wasted 2nd copy).
        return jax.block_until_ready(build(True)(*args))
    except Exception:
        # Fallback for jax versions without BlockSpec(pipeline_mode=...).
        return build(False)(*args)


# --------------------------------------------------------------------------
# Pure-JAX reference matching the PyTorch forward
# --------------------------------------------------------------------------
def last_layer_ref(x, vec, w_mod, b_mod, w_lin, b_lin):
    sv = vec * jax.nn.sigmoid(vec)
    mod = sv @ w_mod.T + b_mod
    H = x.shape[-1]
    shift, scale = mod[:, :H], mod[:, H:]
    mean = jnp.mean(x, axis=-1, keepdims=True)
    var = jnp.mean((x - mean) ** 2, axis=-1, keepdims=True)
    xn = (x - mean) * jax.lax.rsqrt(var + 1e-6)
    xm = (1 + scale[:, None, :]) * xn + shift[:, None, :]
    return xm @ w_lin.T + b_lin


if __name__ == "__main__":
    B, T = 2, 8
    hidden_size = 32
    patch_size = 2
    out_channels = 4
    O = patch_size * patch_size * out_channels  # 16

    key = jax.random.PRNGKey(0)
    k_x, k_v, k_wm, k_bm, k_wl, k_bl = jax.random.split(key, 6)

    x = jax.random.normal(k_x, (B, T, hidden_size), dtype=jnp.float32)
    vec = jax.random.normal(k_v, (B, hidden_size), dtype=jnp.float32)

    w_mod = jax.random.normal(k_wm, (2 * hidden_size, hidden_size),
                              jnp.float32) / jnp.sqrt(hidden_size)
    b_mod = jax.random.normal(k_bm, (2 * hidden_size,), jnp.float32) * 0.01
    w_lin = jax.random.normal(k_wl, (O, hidden_size),
                              jnp.float32) / jnp.sqrt(hidden_size)
    b_lin = jax.random.normal(k_bl, (O,), jnp.float32) * 0.01

    prepared = prepare_last_layer_params(w_lin, b_lin)   # hoisted: once per model
    out = last_layer(x, vec, w_mod, b_mod, w_lin, b_lin, prepared=prepared)
    out = jax.block_until_ready(out)

    ref = last_layer_ref(x, vec, w_mod, b_mod, w_lin, b_lin)
    assert out.shape == (B, T, O)
    assert jnp.allclose(out, ref, atol=1e-4, rtol=1e-4), \
        float(jnp.max(jnp.abs(out - ref)))

    print("KERNEL_OK")
</pallas_src>

<mosaic_0001>
module attributes {stable_mosaic.version = 11 : i64} {
  func.func @_last_layer_kernel(%arg0: i32, %arg1: i32, %arg2: memref<1x8x32xf32, #tpu.memory_space<vmem>>, %arg3: memref<1x1x32xf32, #tpu.memory_space<vmem>>, %arg4: memref<1x1x32xf32, #tpu.memory_space<vmem>>, %arg5: memref<32x128xf32, #tpu.memory_space<vmem>>, %arg6: memref<1x128xf32, #tpu.memory_space<vmem>>, %arg7: memref<1x8x16xf32, #tpu.memory_space<vmem>>) attributes {dimension_semantics = [#tpu.dimension_semantics<parallel>, #tpu.dimension_semantics<parallel>], iteration_bounds = array<i64: 2, 1>, scalar_prefetch = 0 : i64, scratch_operands = 0 : i64, tpu.core_type = #tpu.core_type<tc>, window_params = [{transform_indices = @transform_0, window_bounds = array<i64: 1, 8, 32>}, {transform_indices = @transform_1, window_bounds = array<i64: 1, 1, 32>}, {transform_indices = @transform_2, window_bounds = array<i64: 1, 1, 32>}, {pipeline_mode = #tpu.pipeline_mode<synchronous>, transform_indices = @transform_3, window_bounds = array<i64: 32, 128>}, {pipeline_mode = #tpu.pipeline_mode<synchronous>, transform_indices = @transform_4, window_bounds = array<i64: 1, 128>}, {transform_indices = @transform_5, window_bounds = array<i64: 1, 8, 16>}]} {
    %c0 = arith.constant 0 : index
    %c0_0 = arith.constant 0 : index
    %c0_1 = arith.constant 0 : index
    %0 = vector.load %arg2[%c0, %c0_0, %c0_1] : memref<1x8x32xf32, #tpu.memory_space<vmem>>, vector<1x8x32xf32>
    %1 = vector.shape_cast %0 : vector<1x8x32xf32> to vector<8x32xf32>
    %cst = arith.constant dense<0.000000e+00> : vector<8xf32>
    %2 = vector.multi_reduction <add>, %1, %cst [1] : vector<8x32xf32> to vector<8xf32>
    %3 = vector.shape_cast %2 : vector<8xf32> to vector<8x1xf32>
    %cst_2 = arith.constant 3.125000e-02 : f32
    %4 = vector.broadcast %cst_2 : f32 to vector<8x1xf32>
    %5 = arith.mulf %3, %4 : vector<8x1xf32>
    %6 = arith.mulf %1, %1 : vector<8x32xf32>
    %cst_3 = arith.constant dense<0.000000e+00> : vector<8xf32>
    %7 = vector.multi_reduction <add>, %6, %cst_3 [1] : vector<8x32xf32> to vector<8xf32>
    %8 = vector.shape_cast %7 : vector<8xf32> to vector<8x1xf32>
    %cst_4 = arith.constant 3.125000e-02 : f32
    %9 = vector.broadcast %cst_4 : f32 to vector<8x1xf32>
    %10 = arith.mulf %8, %9 : vector<8x1xf32>
    %11 = arith.mulf %5, %5 : vector<8x1xf32>
    %12 = arith.subf %10, %11 : vector<8x1xf32>
    %cst_5 = arith.constant 9.99999997E-7 : f32
    %13 = vector.broadcast %cst_5 : f32 to vector<8x1xf32>
    %14 = arith.addf %12, %13 : vector<8x1xf32>
    %15 = math.rsqrt %14 : vector<8x1xf32>
    %c0_6 = arith.constant 0 : index
    %c0_7 = arith.constant 0 : index
    %c0_8 = arith.constant 0 : index
    %16 = vector.load %arg4[%c0_6, %c0_7, %c0_8] : memref<1x1x32xf32, #tpu.memory_space<vmem>>, vector<1x1x32xf32>
    %17 = vector.shape_cast %16 : vector<1x1x32xf32> to vector<1x32xf32>
    %18 = vector.broadcast %17 : vector<1x32xf32> to vector<8x32xf32>
    %19 = vector.broadcast %15 : vector<8x1xf32> to vector<8x32xf32>
    %20 = arith.mulf %18, %19 : vector<8x32xf32>
    %c0_9 = arith.constant 0 : index
    %c0_10 = arith.constant 0 : index
    %c0_11 = arith.constant 0 : index
    %21 = vector.load %arg3[%c0_9, %c0_10, %c0_11] : memref<1x1x32xf32, #tpu.memory_space<vmem>>, vector<1x1x32xf32>
    %22 = vector.shape_cast %21 : vector<1x1x32xf32> to vector<1x32xf32>
    %23 = vector.broadcast %5 : vector<8x1xf32> to vector<8x32xf32>
    %24 = arith.mulf %23, %20 : vector<8x32xf32>
    %25 = vector.broadcast %22 : vector<1x32xf32> to vector<8x32xf32>
    %26 = arith.subf %25, %24 : vector<8x32xf32>
    %27 = arith.mulf %1, %20 : vector<8x32xf32>
    %28 = arith.addf %27, %26 : vector<8x32xf32>
    %c0_12 = arith.constant 0 : index
    %c0_13 = arith.constant 0 : index
    %29 = vector.load %arg5[%c0_12, %c0_13] : memref<32x128xf32, #tpu.memory_space<vmem>>, vector<32x128xf32>
    %cst_14 = arith.constant dense<0.000000e+00> : vector<8x128xf32>
    %30 = tpu.matmul %28, %29, %cst_14 {dimension_numbers = #tpu.dot_dimension_numbers<[1], [0], [0], [1], [0, 0, 1, 1], [], []>} : vector<8x32xf32>, vector<32x128xf32>, vector<8x128xf32> -> vector<8x128xf32>
    %c0_15 = arith.constant 0 : index
    %c0_16 = arith.constant 0 : index
    %31 = vector.load %arg6[%c0_15, %c0_16] : memref<1x128xf32, #tpu.memory_space<vmem>>, vector<1x128xf32>
    %32 = vector.broadcast %31 : vector<1x128xf32> to vector<8x128xf32>
    %33 = arith.addf %30, %32 : vector<8x128xf32>
    %34 = vector.extract_strided_slice %33 {offsets = [0, 0], sizes = [8, 16], strides = [1, 1]} : vector<8x128xf32> to vector<8x16xf32>
    %c0_17 = arith.constant 0 : index
    %c0_18 = arith.constant 0 : index
    %c0_19 = arith.constant 0 : index
    %35 = vector.load %arg7[%c0_17, %c0_18, %c0_19] : memref<1x8x16xf32, #tpu.memory_space<vmem>>, vector<1x8x16xf32>
    %36 = vector.shape_cast %35 : vector<1x8x16xf32> to vector<8x16xf32>
    %37 = vector.shape_cast %34 : vector<8x16xf32> to vector<1x8x16xf32>
    tpu.vector_store %arg7[%c0_17, %c0_18, %c0_19], %37 {strides = array<i32>} : memref<1x8x16xf32, #tpu.memory_space<vmem>>, vector<1x8x16xf32>,
    return
  }
  func.func @transform_0(%arg0: i32, %arg1: i32) -> (i32, i32, i32) {
    %c0_i32 = arith.constant 0 : i32
    %c0_i32_0 = arith.constant 0 : i32
    return %arg0, %arg1, %c0_i32 : i32, i32, i32
  }
  func.func @transform_1(%arg0: i32, %arg1: i32) -> (i32, i32, i32) {
    %c0_i32 = arith.constant 0 : i32
    %c0_i32_0 = arith.constant 0 : i32
    %c0_i32_1 = arith.constant 0 : i32
    return %arg0, %c0_i32, %c0_i32_0 : i32, i32, i32
  }
  func.func @transform_2(%arg0: i32, %arg1: i32) -> (i32, i32, i32) {
    %c0_i32 = arith.constant 0 : i32
    %c0_i32_0 = arith.constant 0 : i32
    %c0_i32_1 = arith.constant 0 : i32
    return %arg0, %c0_i32, %c0_i32_0 : i32, i32, i32
  }
  func.func @transform_3(%arg0: i32, %arg1: i32) -> (i32, i32) {
    %c0_i32 = arith.constant 0 : i32
    %c0_i32_0 = arith.constant 0 : i32
    %c0_i32_1 = arith.constant 0 : i32
    return %c0_i32, %c0_i32_0 : i32, i32
  }
  func.func @transform_4(%arg0: i32, %arg1: i32) -> (i32, i32) {
    %c0_i32 = arith.constant 0 : i32
    %c0_i32_0 = arith.constant 0 : i32
    %c0_i32_1 = arith.constant 0 : i32
    return %c0_i32, %c0_i32_0 : i32, i32
  }
  func.func @transform_5(%arg0: i32, %arg1: i32) -> (i32, i32, i32) {
    %c0_i32 = arith.constant 0 : i32
    %c0_i32_0 = arith.constant 0 : i32
    return %arg0, %arg1, %c0_i32 : i32, i32, i32
  }
}

module attributes {stable_mosaic.version = 11 : i64} {
  func.func @_last_layer_kernel(%arg0: i32, %arg1: i32, %arg2: memref<1x8x32xf32, #tpu.memory_space<vmem>>, %arg3: memref<1x1x32xf32, #tpu.memory_space<vmem>>, %arg4: memref<1x1x32xf32, #tpu.memory_space<vmem>>, %arg5: memref<32x128xf32, #tpu.memory_space<vmem>>, %arg6: memref<1x128xf32, #tpu.memory_space<vmem>>, %arg7: memref<1x8x16xf32, #tpu.memory_space<vmem>>) attributes {dimension_semantics = [#tpu.dimension_semantics<parallel>, #tpu.dimension_semantics<parallel>], iteration_bounds = array<i64: 2, 1>, scalar_prefetch = 0 : i64, scratch_operands = 0 : i64, tpu.core_type = #tpu.core_type<tc>, window_params = [{transform_indices = @transform_0, window_bounds = array<i64: 1, 8, 32>}, {transform_indices = @transform_1, window_bounds = array<i64: 1, 1, 32>}, {transform_indices = @transform_2, window_bounds = array<i64: 1, 1, 32>}, {pipeline_mode = #tpu.pipeline_mode<synchronous>, transform_indices = @transform_3, window_bounds = array<i64: 32, 128>}, {pipeline_mode = #tpu.pipeline_mode<synchronous>, transform_indices = @transform_4, window_bounds = array<i64: 1, 128>}, {transform_indices = @transform_5, window_bounds = array<i64: 1, 8, 16>}]} {
    %c0 = arith.constant 0 : index
    %c0_0 = arith.constant 0 : index
    %c0_1 = arith.constant 0 : index
    %0 = vector.load %arg2[%c0, %c0_0, %c0_1] : memref<1x8x32xf32, #tpu.memory_space<vmem>>, vector<1x8x32xf32>
    %1 = vector.shape_cast %0 : vector<1x8x32xf32> to vector<8x32xf32>
    %cst = arith.constant dense<0.000000e+00> : vector<8xf32>
    %2 = vector.multi_reduction <add>, %1, %cst [1] : vector<8x32xf32> to vector<8xf32>
    %3 = vector.shape_cast %2 : vector<8xf32> to vector<8x1xf32>
    %cst_2 = arith.constant 3.125000e-02 : f32
    %4 = vector.broadcast %cst_2 : f32 to vector<8x1xf32>
    %5 = arith.mulf %3, %4 : vector<8x1xf32>
    %6 = arith.mulf %1, %1 : vector<8x32xf32>
    %cst_3 = arith.constant dense<0.000000e+00> : vector<8xf32>
    %7 = vector.multi_reduction <add>, %6, %cst_3 [1] : vector<8x32xf32> to vector<8xf32>
    %8 = vector.shape_cast %7 : vector<8xf32> to vector<8x1xf32>
    %cst_4 = arith.constant 3.125000e-02 : f32
    %9 = vector.broadcast %cst_4 : f32 to vector<8x1xf32>
    %10 = arith.mulf %8, %9 : vector<8x1xf32>
    %11 = arith.mulf %5, %5 : vector<8x1xf32>
    %12 = arith.subf %10, %11 : vector<8x1xf32>
    %cst_5 = arith.constant 9.99999997E-7 : f32
    %13 = vector.broadcast %cst_5 : f32 to vector<8x1xf32>
    %14 = arith.addf %12, %13 : vector<8x1xf32>
    %15 = math.rsqrt %14 : vector<8x1xf32>
    %c0_6 = arith.constant 0 : index
    %c0_7 = arith.constant 0 : index
    %c0_8 = arith.constant 0 : index
    %16 = vector.load %arg4[%c0_6, %c0_7, %c0_8] : memref<1x1x32xf32, #tpu.memory_space<vmem>>, vector<1x1x32xf32>
    %17 = vector.shape_cast %16 : vector<1x1x32xf32> to vector<1x32xf32>
    %18 = vector.broadcast %17 : vector<1x32xf32> to vector<8x32xf32>
    %19 = vector.broadcast %15 : vector<8x1xf32> to vector<8x32xf32>
    %20 = arith.mulf %18, %19 : vector<8x32xf32>
    %c0_9 = arith.constant 0 : index
    %c0_10 = arith.constant 0 : index
    %c0_11 = arith.constant 0 : index
    %21 = vector.load %arg3[%c0_9, %c0_10, %c0_11] : memref<1x1x32xf32, #tpu.memory_space<vmem>>, vector<1x1x32xf32>
    %22 = vector.shape_cast %21 : vector<1x1x32xf32> to vector<1x32xf32>
    %23 = vector.broadcast %5 : vector<8x1xf32> to vector<8x32xf32>
    %24 = arith.mulf %23, %20 : vector<8x32xf32>
    %25 = vector.broadcast %22 : vector<1x32xf32> to vector<8x32xf32>
    %26 = arith.subf %25, %24 : vector<8x32xf32>
    %27 = arith.mulf %1, %20 : vector<8x32xf32>
    %28 = arith.addf %27, %26 : vector<8x32xf32>
    %c0_12 = arith.constant 0 : index
    %c0_13 = arith.constant 0 : index
    %29 = vector.load %arg5[%c0_12, %c0_13] : memref<32x128xf32, #tpu.memory_space<vmem>>, vector<32x128xf32>
    %cst_14 = arith.constant dense<0.000000e+00> : vector<8x128xf32>
    %30 = tpu.matmul %28, %29, %cst_14 {dimension_numbers = #tpu.dot_dimension_numbers<[1], [0], [0], [1], [0, 0, 1, 1], [], []>} : vector<8x32xf32>, vector<32x128xf32>, vector<8x128xf32> -> vector<8x128xf32>
    %c0_15 = arith.constant 0 : index
    %c0_16 = arith.constant 0 : index
    %31 = vector.load %arg6[%c0_15, %c0_16] : memref<1x128xf32, #tpu.memory_space<vmem>>, vector<1x128xf32>
    %32 = vector.broadcast %31 : vector<1x128xf32> to vector<8x128xf32>
    %33 = arith.addf %30, %32 : vector<8x128xf32>
    %34 = vector.extract_strided_slice %33 {offsets = [0, 0], sizes = [8, 16], strides = [1, 1]} : vector<8x128xf32> to vector<8x16xf32>
    %c0_17 = arith.constant 0 : index
    %c0_18 = arith.constant 0 : index
    %c0_19 = arith.constant 0 : index
    %35 = vector.load %arg7[%c0_17, %c0_18, %c0_19] : memref<1x8x16xf32, #tpu.memory_space<vmem>>, vector<1x8x16xf32>
    %36 = vector.shape_cast %35 : vector<1x8x16xf32> to vector<8x16xf32>
    %37 = vector.shape_cast %34 : vector<8x16xf32> to vector<1x8x16xf32>
    tpu.vector_store %arg7[%c0_17, %c0_18, %c0_19], %37 {strides = array<i32>} : memref<1x8x16xf32, #tpu.memory_space<vmem>>, vector<1x8x16xf32>,
    return
  }
  func.func @transform_0(%arg0: i32, %arg1: i32) -> (i32, i32, i32) {
    %c0_i32 = arith.constant 0 : i32
    %c0_i32_0 = arith.constant 0 : i32
    return %arg0, %arg1, %c0_i32 : i32, i32, i32
  }
  func.func @transform_1(%arg0: i32, %arg1: i32) -> (i32, i32, i32) {
    %c0_i32 = arith.constant 0 : i32
    %c0_i32_0 = arith.constant 0 : i32
    %c0_i32_1 = arith.constant 0 : i32
    return %arg0, %c0_i32, %c0_i32_0 : i32, i32, i32
  }
  func.func @transform_2(%arg0: i32, %arg1: i32) -> (i32, i32, i32) {
    %c0_i32 = arith.constant 0 : i32
    %c0_i32_0 = arith.constant 0 : i32
    %c0_i32_1 = arith.constant 0 : i32
    return %arg0, %c0_i32, %c0_i32_0 : i32, i32, i32
  }
  func.func @transform_3(%arg0: i32, %arg1: i32) -> (i32, i32) {
    %c0_i32 = arith.constant 0 : i32
    %c0_i32_0 = arith.constant 0 : i32
    %c0_i32_1 = arith.constant 0 : i32
    return %c0_i32, %c0_i32_0 : i32, i32
  }
  func.func @transform_4(%arg0: i32, %arg1: i32) -> (i32, i32) {
    %c0_i32 = arith.constant 0 : i32
    %c0_i32_0 = arith.constant 0 : i32
    %c0_i32_1 = arith.constant 0 : i32
    return %c0_i32, %c0_i32_0 : i32, i32
  }
  func.func @transform_5(%arg0: i32, %arg1: i32) -> (i32, i32, i32) {
    %c0_i32 = arith.constant 0 : i32
    %c0_i32_0 = arith.constant 0 : i32
    return %arg0, %arg1, %c0_i32 : i32, i32, i32
  }
}

</mosaic_0001>

<bundles_post_ra>
// kernel: tpu_custom_call.1
= control target key start
LH: loop header
LB: loop body
LE: loop exit
PB: predicated region body
PF: predicated region fallthrough
CT: control target
= control target key end

     0   :  { %s1107_s0 = inlined_call_operand.hbm [shape: f32[2,8,32], index: 0, kind: input, shape index: {}]   ;;  %s1108_s1 = inlined_call_operand.hbm [shape: f32[2,1,32], index: 1, kind: input, shape index: {}]   ;;  %s1109_s2 = inlined_call_operand.vmem [shape: f32[2,1,32], index: 2, kind: input, shape index: {}]   ;;  %s1110_s3 = inlined_call_operand.hbm [shape: f32[32,128], index: 3, kind: input, shape index: {}]   ;;  %s1111_s4 = inlined_call_operand.vmem [shape: f32[1,128], index: 4, kind: input, shape index: {}]   ;;  %s1112_s5 = inlined_call_operand.hbm [shape: f32[2,8,16], index: 5, kind: output, shape index: {}]  }
   0x1   :  { %1115 = sst [smem:[#allocation16_spill]] %s1107_s0 }
   0x2   :  { %1116 = sst [smem:[#allocation17_spill]] %s1110_s3 }
   0x3   :  { %10 = vsyncpa [#allocation3], 0 }
   0x4   :  { %12 = vsyncpa [#allocation3 + $0x1], 0 }
   0x5   :  { %13 = vsyncpa [#allocation6], 0 }
   0x6   :  { %15 = vsyncpa [#allocation6 + $0x1], 0 }
   0x7   :  { %16 = vsyncpa [#allocation4], 0 }
   0x8   :  { %18 = vsyncpa [#allocation4 + $0x1], 0  ;;  %s902_s18 = smov 0   ;;  %s904_s19 = smov 0  }
   0x9   :  { %s906_s20 = smov 0   ;;  %s908_s21 = smov 0  }
   0xa   :  { %s910_s22 = smov 0   ;;  %s912_s23 = smov 0  }
   0xb LB: > { %1117 = sst [smem:[#allocation13_spill]] %s850_s20  ;;  %s933_s24 = sadd.s32 4294967295, %s862_s23   ;;  %s862_s23 = sphi %s912_s23, %s24_s23   ;;  %s858_s22 = sphi %s910_s22, %s1137_s22   ;;  %s854_s21 = sphi %s908_s21, %s1136_s21   ;;  %s850_s20 = sphi %s906_s20, %s1132_s20   ;;  %s846_s19 = sphi %s904_s19, %s1135_s19   ;;  %s842_s18 = sphi %s902_s18, %s1134_s18  }
   0xc   : > { %s573_s25 = sadd.s32 4294967294, %s862_s23   ;;  %p58_p0 = scmp.ne.s32.totalorder %s846_s19, %s842_s18 }
   0xd   : > { %p59_p1 = scmp.eq.s32.totalorder %s933_s24, 0  ;;  %p184_p3 = scmp.eq.s32.totalorder %s573_s25, 1 }
   0xe   : > { %p574_p5 = scmp.ge.s32.totalorder %s862_s23, 1  ;;  %p191_p7 = scmp.lt.s32.totalorder %s862_s23, 3 }
   0xf   : > { %p942_p4 = por %p59_p1, %p58_p0  ;;  %p947_p6 = por %p184_p3, %p58_p0 }
  0x10   : > { %p952_p8 = pnand %p574_p5, %p191_p7  ;;  %s864_s29 = smov [#allocation7]  }
  0x11   : > { %s1119_s27 = scalar_select %p947_p6, 1, 0 }
  0x12   : > { %s203_s30 = sshll.u32 %s864_s29, 4  ;;  %p618_p9 = pneg %p952_p8  ;;  %s204_s30 = int_to_ptr.vmem [resolvable:$true] %s203_s30 }
  0x13   : > { %p576_p10 = scmp.ge.s32.totalorder %s862_s23, 2  ;;  %s36_s7 = sadd.s32 1, %s858_s22 }
  0x14   : > { %p961_p11 = pnand %p618_p9, %p59_p1  ;;  %s703_s8 = scalar_lea.vmem %s204_s30, 512 }
  0x15   : > { %p704_p13 = scmp.ne.s32.totalorder %s204_s30, %s703_s8  ;;  %p711_p5 = scmp.lt.s32.totalorder %s204_s30, %s204_s30 }
  0x16   : > { %p694_p12 = pneg %p961_p11  ;;  %p712_p7 = scmp.lt.s32.totalorder %s703_s8, %s703_s8 }
  0x18   : > { %p706_p0 = pnand %p704_p13, %p694_p12  ;;  %p713_p2 = por %p712_p7, %p711_p5 }
  0x1a   : > { %p707_p3 = pneg %p706_p0 }
  0x1c   : > { %p714_p6 = pnand %p713_p2, %p707_p3 }
  0x1e   : > { %717 = shalt.err (!%p714_p6)
}
  0x1f   : > { %s865_s9 = smov 128   ;;  %s866_s10 = smov 8  }
  0x20   : > { %s1122_s3 = sld [smem:[#allocation17_spill]]  ;;  %p38_p2 = scmp.ge.s32.totalorder %s36_s7, 2 }
  0x21   : > { %s45_s13 = sadd.s32 1, %s850_s20  ;;  %p52_p6 = scmp.ne.s32.totalorder %s850_s20, %s846_s19 }
  0x22   : > { %p53_p9 = scmp.eq.s32.totalorder %s862_s23, 0  ;;  %s1139_s7 = smov (%p38_p2, %s36_s7), 0 }
  0x23   : > { %1123 = sst [smem:[#allocation14_spill]] %s1139_s7  ;;  %p1125_p13 = scmp.eq.s32.totalorder %s933_s24, 1 }
  0x24   : > { %p979_p12 = por %p53_p9, %p52_p6  ;;  %s40_s16 = ssub.s32 %s858_s22, %s1139_s7 }
  0x25   : > { %p985_p0 = por %p1125_p13, %p52_p6  ;;  %p43_p3 = scmp.eq.s32.totalorder %s40_s16, 0 }
  0x26   : > { %621 = dma.hbm_to_vmem [thread:$0]  (!%p961_p11), %s1122_s3, 512, %s204_s30, [#allocation6], %s865_s9, %s865_s9, %s866_s10  }
  0x27   : > { %p634_p11 = scmp.lt.s32.totalorder %s862_s23, 2  ;;  %s220_s17 = sand.u32 1, %s850_s20  }
  0x28   : > { %s577_s25 = sshll.u32 %s220_s17, 3  ;;  %s578_s30 = sshll.u32 %s858_s22, 7 }
  0x29   : > { %s994_s29 = scalar_select %p43_p3, %s850_s20, %s45_s13  }
  0x2a   : > { %s1128_s0 = sld [smem:[#allocation16_spill]]  ;;  %s224_s10 = scalar_lea.vmem [#allocation2], %s577_s25 }
  0x2b   : > { %1127 = sst [smem:[#allocation15_spill]] %s994_s29  ;;  %s232_s11 = sshll.u32 %s224_s10, 4  ;;  %s233_s11 = int_to_ptr.vmem [resolvable:$true] %s232_s11 }
  0x2c   : > { %p1002_p5 = pnand %p634_p11, %p979_p12  ;;  %s239_s16 = sand.u32 1, %s862_s23  }
  0x2d   : > { %s221_s3 = scalar_lea.sflag [#allocation3], %s220_s17  ;;  %s731_s13 = scalar_lea.vmem %s233_s11, 128 }
  0x2e   : > { %p720_p7 = pneg %p1002_p5  ;;  %p732_p2 = scmp.ne.s32.totalorder %s233_s11, %s731_s13 }
  0x2f   : > { %s867_s25 = smov [#allocation2]  }
  0x30   : > { %s230_s9 = scalar_lea.hbm %s1128_s0, %s578_s30  ;;  %p734_p6 = pnand %p732_p2, %p720_p7 }
  0x31   : > { %s736_s30 = sshll.u32 %s867_s25, 4  ;;  %s737_s30 = int_to_ptr.vmem [resolvable:$false] %s736_s30 }
  0x32   : > { %p735_p9 = pneg %p734_p6  ;;  %s738_s14 = scalar_lea.vmem %s737_s30, 256 }
  0x33   : > { %p739_p12 = scmp.lt.s32.totalorder %s233_s11, %s737_s30  ;;  %p740_p13 = scmp.lt.s32.totalorder %s738_s14, %s731_s13 }
  0x35   : > { %p741_p11 = por %p740_p13, %p739_p12 }
  0x37   : > { %p742_p3 = pnand %p741_p11, %p735_p9 }
  0x39   : > { %745 = shalt.err (!%p742_p3)
}
  0x3a   : > { %625 = dma.hbm_to_vmem [thread:$0]  (!%p1002_p5), %s230_s9, 128, %s233_s11, %s221_s3  }
  0x3b   : > { %s579_s6 = sshll.u32 %s858_s22, 4  ;;  %s242_s8 = scalar_lea.vmem [#allocation5], %s220_s17 }
  0x3c   : > { %s249_s10 = sshll.u32 %s242_s8, 4  ;;  %s247_s29 = scalar_lea.hbm %s1108_s1, %s579_s6  ;;  %s250_s10 = int_to_ptr.vmem [resolvable:$true] %s249_s10 }
  0x3d   : > { %s240_s25 = scalar_lea.sflag [#allocation6], %s239_s16  ;;  %s759_s20 = scalar_lea.vmem %s250_s10, 16 }
  0x3e   : > { %p760_p2 = scmp.ne.s32.totalorder %s250_s10, %s759_s20  ;;  %s868_s13 = smov [#allocation5]  }
  0x3f   : > { %s764_s30 = sshll.u32 %s868_s13, 4  ;;  %s765_s30 = int_to_ptr.vmem [resolvable:$false] %s764_s30 }
  0x40   : > { %p762_p6 = pnand %p760_p2, %p720_p7  ;;  %s766_s14 = scalar_lea.vmem %s765_s30, 32 }
  0x41   : > { %p767_p12 = scmp.lt.s32.totalorder %s250_s10, %s765_s30  ;;  %p768_p13 = scmp.lt.s32.totalorder %s766_s14, %s759_s20 }
  0x42   : > { %p763_p9 = pneg %p762_p6 }
  0x43   : > { %p769_p11 = por %p768_p13, %p767_p12 }
  0x45   : > { %p770_p3 = pnand %p769_p11, %p763_p9 }
  0x47   : > { %773 = shalt.err (!%p770_p3)
}
  0x48   : > { %628 = dma.hbm_to_vmem [thread:$0]  (!%p1002_p5), %s247_s29, 16, %s250_s10, %s240_s25  }
  0x49   : > { %264 = sbr.rel (%p952_p8) target bundleno = 464 (0x1d0), region = 40  ;;  %s1026_s0 = sand.u32 (!%p952_p8), 1, %s846_s19  }
  0x4a   : > { %s581_s3 = sshll.u32 (!%p952_p8), %s1026_s0, 3  ;;  %s267_s7 = scalar_lea.sflag (!%p952_p8), [#allocation3], %s1026_s0 }
  0x4b   : > { %s270_s20 = scalar_lea.vmem (!%p952_p8), [#allocation2], %s581_s3 }
  0x4e   : > { %825 = dma.done.wait (%p942_p4), %s267_s7, 128  }
  0x4f   : > { %827 = vsyncadd (%p942_p4), %s267_s7, 4294967168  ;;  %s275_s28 = sand.u32 1, %s933_s24   ;;  %s278_s29 = scalar_lea.vmem [#allocation5], %s1026_s0 }
  0x50   : > { %s276_s17 = scalar_lea.sflag [#allocation6], %s275_s28 }
  0x51   : > { %829 = dma.done.wait (%p942_p4), %s276_s17, 16  }
  0x52   : > { %831 = vsyncadd (%p942_p4), %s276_s17, 4294967280 }
  0x53   : > { %833 = dma.done.wait (%p59_p1), [#allocation6], 512  }
  0x54   : > { %835 = vsyncadd (%p59_p1), [#allocation6], 4294966784  ;;  %vm320_vm0 = vcmask 261120   ;;  %v319_v0 = vld [vmem:[%s270_s20] sm:$0xff]  ;;  %v869_v5 = vmov 0.0   ;;  %vm870_vm1 = vmmov 0  }
  0x55   : > { %v321_v1 = vsel %vm320_vm0, %v319_v0, 0.0  ;;  %v325_v2 = vmul.f32 %v319_v0, %v319_v0  ;;  %v356_v4 = vld [vmem:[#allocation7 + $0x18] sm:$0xff]  ;;  %597 = vmatprep.subr.mxu0 %v869_v5  ;;  %v355_v6 = vld [vmem:[#allocation7 + $0x10] sm:$0xff]  ;;  %605 = vmatprep.mubr.msk.f32.mxu0 %vm870_vm1, %v869_v5  ;;  %v354_v7 = vld [vmem:[#allocation7 + $0x8] sm:$0xff]  ;;  %p316_p1 = scmp.lt.s32.totalorder %s854_s21, 1  ;;  %s589_s6 = sshll.u32 %s854_s21, 7 }
  0x56   : > { %322 = vadd.xlane.f32.xlu0 %v321_v1  ;;  %598 = vmatpush3.msra.mxu0 %v356_v4  ;;  %v353_v8 = vld [vmem:[#allocation7] sm:$0xff]  ;;  %v585_v19 = vld [vmem:[%s278_s29] ss:$0 sm:$0xff]  ;;  %s315_s8 = scalar_lea.vmem [#allocation8], %s581_s3  ;;  %vm437_vm2 = vcmask 130048   ;;  %s1065_s30 = scalar_lea.hbm %s1112_s5, %s589_s6 }
  0x57   : > { %v326_v3 = vsel %vm320_vm0, %v325_v2, 0.0  ;;  %599 = vmatprep.subr.mxu0 %v869_v5  ;;  %s317_s24 = scalar_select %p316_p1, %s854_s21, 1  ;;  %v586_v24 = vld [vmem:[%s1111_s4] ss:$0 sm:$0xff] }
  0x58   : > { %600 = vmatpush3.msra.mxu0 %v355_v6  ;;  %s454_s10 = sshll.u32 %s315_s8, 4  ;;  %s440_s14 = scalar_lea.sflag [#allocation4], %s1026_s0  ;;  %s455_s10 = int_to_ptr.vmem [resolvable:$true] %s454_s10 }
  0x59   : > { %601 = vmatprep.subr.mxu0 %v869_v5  ;;  %s318_s11 = scalar_lea.vmem %s1109_s2, %s317_s24  ;;  %s774_s7 = scalar_lea.vmem %s455_s10, 128 }
  0x5a   : > { %327 = vadd.xlane.f32.xlu0 %v326_v3  ;;  %602 = vmatpush3.msra.mxu0 %v354_v7  ;;  %v584_v16 = vld [vmem:[%s318_s11] ss:$0 sm:$0xff]  ;;  %p775_p4 = scmp.ne.s32.totalorder %s455_s10, %s774_s7  ;;  %s871_s21 = smov [#allocation8]  }
  0x5b   : > { %603 = vmatprep.subr.mxu0 %v869_v5  ;;  %s778_s3 = sshll.u32 %s871_s21, 4  ;;  %s779_s3 = int_to_ptr.vmem [resolvable:$false] %s778_s3 }
  0x5c   : > { %604 = vmatpush3.msra.mxu0 %v353_v8  ;;  %p776_p8 = pnand %p775_p4, %p985_p0  ;;  %s780_s20 = scalar_lea.vmem %s779_s3, 256 }
  0x5d   : > { %p781_p7 = scmp.lt.s32.totalorder %s455_s10, %s779_s3  ;;  %p782_p2 = scmp.lt.s32.totalorder %s780_s20, %s774_s7 }
  0x5e   : > { %p777_p5 = pneg %p776_p8 }
  0x5f   : > { %p783_p6 = por %p782_p2, %p781_p7 }
  0x61   : > { %p784_p9 = pnand %p783_p6, %p777_p5 }
  0xdf   : > { %v323_v9 = vpop.xlane.xlu0 %322 }
  0xe0   : > { %v324_v10 = vmul.f32 0.03125, %v323_v9 }
  0xe2   : > { %v330_v12 = vmul.f32 %v324_v10, %v324_v10 }
  0xe3   : > { %v328_v11 = vpop.xlane.xlu0 %327 }
  0xe4   : > { %v329_v13 = vmul.f32 0.03125, %v328_v11 }
  0xe6   : > { %v331_v14 = vsub.f32 %v329_v13, %v330_v12 }
  0xe8   : > { %v332_v15 = vadd.f32 1e-06, %v331_v14 }
  0xea   : > { %690 = vrsqrt.f32 %v332_v15 }
  0xf7   : > { %v691_v17 = vpop.eup %690 }
  0xf8   : > { %v341_v18 = vmul.f32 %v691_v17, %v584_v16 }
  0xfa   : > { %v343_v20 = vmul.f32 %v341_v18, %v324_v10  ;;  %v351_v22 = vmul.f32 %v341_v18, %v319_v0 }
  0xfc   : > { %v350_v21 = vsub.f32 %v585_v19, %v343_v20 }
  0xfe   : > { %v352_v23 = vadd.f32 %v351_v22, %v350_v21 }
 0x100   : > { %606 = vmatmul.mubr.msk.f32.vlgmr.msra.gmra.mxu0 %vm320_vm0, %v352_v23 }
 0x1c0   : > { %v433_v25 = vpop.f32.mrf.mxu0 }
 0x1c1   : > { %v434_v26 = vadd.f32 %v586_v24, %v433_v25 }
 0x1c2   : > { %v607_v27 = vpop.f32.mrf.mxu0 }
 0x1c3   : > { %438 = vst.msk [vmem:[%s315_s8] sm:$0xff] %vm437_vm2, %v434_v26 }
 0x1c4   : > { %787 = shalt.err (!%p784_p9)
}
 0x1c5   : > { %s788_s28 = scalar_lea.hbm %s1065_s30, 128  ;;  %s792_s29 = scalar_lea.hbm %s1112_s5, 256 }
 0x1c6   : > { %p789_p12 = scmp.ne.s32.totalorder %s1065_s30, %s788_s28  ;;  %p793_p3 = scmp.lt.s32.totalorder %s1065_s30, %s1112_s5 }
 0x1c7   : > { %p794_p1 = scmp.lt.s32.totalorder %s792_s29, %s788_s28 }
 0x1c8   : > { %p790_p13 = pnand %p789_p12, %p985_p0 }
 0x1c9   : > { %p795_p4 = por %p794_p1, %p793_p3 }
 0x1ca   : > { %p791_p11 = pneg %p790_p13 }
 0x1cc   : > { %p796_p8 = pnand %p795_p4, %p791_p11 }
 0x1ce   : > { %799 = shalt.err (!%p796_p8)
}
 0x1cf   : > { %616 = dma.vmem_to_hbm [thread:$0]  (%p985_p0), %s455_s10, 128, %s1065_s30, %s440_s14  }
 0x1d0 PF: > { %s466_s9 = sand.u32 1, %s842_s18   ;;  %p1130_p5 = scmp.ne.s32.totalorder %s1119_s27, 0 }
 0x1d1   : > { %s467_s11 = scalar_lea.sflag [#allocation4], %s466_s9 }
 0x1d2   : > { %p630_p7 = pnand %p576_p10, %p1130_p5 }
 0x1d4   : > { %p631_p2 = pneg %p630_p7 }
 0x1d6   : > { %837 = dma.done.wait (%p631_p2), %s467_s11, 128  }
 0x1d7   : > { %839 = vsyncadd (%p631_p2), %s467_s11, 4294967168  ;;  %s24_s23 = sadd.s32 1, %s862_s23   ;;  %s1131_s12 = sld [smem:[#allocation13_spill]] }
 0x1d8   : > { %p21_p6 = scmp.ge.s32.totalorder %s24_s23, 4   ;;  %s1132_s20 = sld [smem:[#allocation15_spill]] }
 0x1d9   : > { %s1133_s15 = sld [smem:[#allocation14_spill]]  ;;  %s1134_s18 = smov %s846_s19 }
 0x1da   : > { %s1136_s21 = smov %s858_s22 }
 0x1db   :  { %23 = sbr.rel (!%p21_p6) target bundleno = 11 (0xb), region = 105 }
 0x1dd   : > { %s1135_s19 = smov %s1131_s12 }
 0x1df   : > { %s1137_s22 = smov %s1133_s15 }
 0x1e0   :  { %472 = vsyncpa [#allocation3], 1 }
 0x1e1   :  { %474 = vsyncpa [#allocation3 + $0x1], 1 }
 0x1e2   :  { %475 = vsyncpa [#allocation6], 1 }
 0x1e3   :  { %477 = vsyncpa [#allocation6 + $0x1], 1 }
 0x1e4   :  { %478 = vsyncpa [#allocation4], 1 }
 0x1e5   :  { %480 = vsyncpa [#allocation4 + $0x1], 1 }

// kernel: tpu_custom_call.1
= control target key start
LH: loop header
LB: loop body
LE: loop exit
PB: predicated region body
PF: predicated region fallthrough
CT: control target
= control target key end

     0   :  { %s1107_s0 = inlined_call_operand.hbm [shape: f32[2,8,32], index: 0, kind: input, shape index: {}]   ;;  %s1108_s1 = inlined_call_operand.hbm [shape: f32[2,1,32], index: 1, kind: input, shape index: {}]   ;;  %s1109_s2 = inlined_call_operand.vmem [shape: f32[2,1,32], index: 2, kind: input, shape index: {}]   ;;  %s1110_s3 = inlined_call_operand.hbm [shape: f32[32,128], index: 3, kind: input, shape index: {}]   ;;  %s1111_s4 = inlined_call_operand.vmem [shape: f32[1,128], index: 4, kind: input, shape index: {}]   ;;  %s1112_s5 = inlined_call_operand.hbm [shape: f32[2,8,16], index: 5, kind: output, shape index: {}]  }
   0x1   :  { %1115 = sst [smem:[#allocation16_spill]] %s1107_s0 }
   0x2   :  { %1116 = sst [smem:[#allocation17_spill]] %s1110_s3 }
   0x3   :  { %10 = vsyncpa [#allocation3], 0 }
   0x4   :  { %12 = vsyncpa [#allocation3 + $0x1], 0 }
   0x5   :  { %13 = vsyncpa [#allocation6], 0 }
   0x6   :  { %15 = vsyncpa [#allocation6 + $0x1], 0 }
   0x7   :  { %16 = vsyncpa [#allocation4], 0 }
   0x8   :  { %18 = vsyncpa [#allocation4 + $0x1], 0  ;;  %s902_s18 = smov 0   ;;  %s904_s19 = smov 0  }
   0x9   :  { %s906_s20 = smov 0   ;;  %s908_s21 = smov 0  }
   0xa   :  { %s910_s22 = smov 0   ;;  %s912_s23 = smov 0  }
   0xb LB: > { %1117 = sst [smem:[#allocation13_spill]] %s850_s20  ;;  %s933_s24 = sadd.s32 4294967295, %s862_s23   ;;  %s862_s23 = sphi %s912_s23, %s24_s23   ;;  %s858_s22 = sphi %s910_s22, %s1137_s22   ;;  %s854_s21 = sphi %s908_s21, %s1136_s21   ;;  %s850_s20 = sphi %s906_s20, %s1132_s20   ;;  %s846_s19 = sphi %s904_s19, %s1135_s19   ;;  %s842_s18 = sphi %s902_s18, %s1134_s18  }
   0xc   : > { %s573_s25 = sadd.s32 4294967294, %s862_s23   ;;  %p58_p0 = scmp.ne.s32.totalorder %s846_s19, %s842_s18 }
   0xd   : > { %p59_p1 = scmp.eq.s32.totalorder %s933_s24, 0  ;;  %p184_p3 = scmp.eq.s32.totalorder %s573_s25, 1 }
   0xe   : > { %p574_p5 = scmp.ge.s32.totalorder %s862_s23, 1  ;;  %p191_p7 = scmp.lt.s32.totalorder %s862_s23, 3 }
   0xf   : > { %p942_p4 = por %p59_p1, %p58_p0  ;;  %p947_p6 = por %p184_p3, %p58_p0 }
  0x10   : > { %p952_p8 = pnand %p574_p5, %p191_p7  ;;  %s864_s29 = smov [#allocation7]  }
  0x11   : > { %s1119_s27 = scalar_select %p947_p6, 1, 0 }
  0x12   : > { %s203_s30 = sshll.u32 %s864_s29, 4  ;;  %p618_p9 = pneg %p952_p8  ;;  %s204_s30 = int_to_ptr.vmem [resolvable:$true] %s203_s30 }
  0x13   : > { %p576_p10 = scmp.ge.s32.totalorder %s862_s23, 2  ;;  %s36_s7 = sadd.s32 1, %s858_s22 }
  0x14   : > { %p961_p11 = pnand %p618_p9, %p59_p1  ;;  %s703_s8 = scalar_lea.vmem %s204_s30, 512 }
  0x15   : > { %p704_p13 = scmp.ne.s32.totalorder %s204_s30, %s703_s8  ;;  %p711_p5 = scmp.lt.s32.totalorder %s204_s30, %s204_s30 }
  0x16   : > { %p694_p12 = pneg %p961_p11  ;;  %p712_p7 = scmp.lt.s32.totalorder %s703_s8, %s703_s8 }
  0x18   : > { %p706_p0 = pnand %p704_p13, %p694_p12  ;;  %p713_p2 = por %p712_p7, %p711_p5 }
  0x1a   : > { %p707_p3 = pneg %p706_p0 }
  0x1c   : > { %p714_p6 = pnand %p713_p2, %p707_p3 }
  0x1e   : > { %717 = shalt.err (!%p714_p6)
}
  0x1f   : > { %s865_s9 = smov 128   ;;  %s866_s10 = smov 8  }
  0x20   : > { %s1122_s3 = sld [smem:[#allocation17_spill]]  ;;  %p38_p2 = scmp.ge.s32.totalorder %s36_s7, 2 }
  0x21   : > { %s45_s13 = sadd.s32 1, %s850_s20  ;;  %p52_p6 = scmp.ne.s32.totalorder %s850_s20, %s846_s19 }
  0x22   : > { %p53_p9 = scmp.eq.s32.totalorder %s862_s23, 0  ;;  %s1139_s7 = smov (%p38_p2, %s36_s7), 0 }
  0x23   : > { %1123 = sst [smem:[#allocation14_spill]] %s1139_s7  ;;  %p1125_p13 = scmp.eq.s32.totalorder %s933_s24, 1 }
  0x24   : > { %p979_p12 = por %p53_p9, %p52_p6  ;;  %s40_s16 = ssub.s32 %s858_s22, %s1139_s7 }
  0x25   : > { %p985_p0 = por %p1125_p13, %p52_p6  ;;  %p43_p3 = scmp.eq.s32.totalorder %s40_s16, 0 }
  0x26   : > { %621 = dma.hbm_to_vmem [thread:$0]  (!%p961_p11), %s1122_s3, 512, %s204_s30, [#allocation6], %s865_s9, %s865_s9, %s866_s10  }
  0x27   : > { %p634_p11 = scmp.lt.s32.totalorder %s862_s23, 2  ;;  %s220_s17 = sand.u32 1, %s850_s20  }
  0x28   : > { %s577_s25 = sshll.u32 %s220_s17, 3  ;;  %s578_s30 = sshll.u32 %s858_s22, 7 }
  0x29   : > { %s994_s29 = scalar_select %p43_p3, %s850_s20, %s45_s13  }
  0x2a   : > { %s1128_s0 = sld [smem:[#allocation16_spill]]  ;;  %s224_s10 = scalar_lea.vmem [#allocation2], %s577_s25 }
  0x2b   : > { %1127 = sst [smem:[#allocation15_spill]] %s994_s29  ;;  %s232_s11 = sshll.u32 %s224_s10, 4  ;;  %s233_s11 = int_to_ptr.vmem [resolvable:$true] %s232_s11 }
  0x2c   : > { %p1002_p5 = pnand %p634_p11, %p979_p12  ;;  %s239_s16 = sand.u32 1, %s862_s23  }
  0x2d   : > { %s221_s3 = scalar_lea.sflag [#allocation3], %s220_s17  ;;  %s731_s13 = scalar_lea.vmem %s233_s11, 128 }
  0x2e   : > { %p720_p7 = pneg %p1002_p5  ;;  %p732_p2 = scmp.ne.s32.totalorder %s233_s11, %s731_s13 }
  0x2f   : > { %s867_s25 = smov [#allocation2]  }
  0x30   : > { %s230_s9 = scalar_lea.hbm %s1128_s0, %s578_s30  ;;  %p734_p6 = pnand %p732_p2, %p720_p7 }
  0x31   : > { %s736_s30 = sshll.u32 %s867_s25, 4  ;;  %s737_s30 = int_to_ptr.vmem [resolvable:$false] %s736_s30 }
  0x32   : > { %p735_p9 = pneg %p734_p6  ;;  %s738_s14 = scalar_lea.vmem %s737_s30, 256 }
  0x33   : > { %p739_p12 = scmp.lt.s32.totalorder %s233_s11, %s737_s30  ;;  %p740_p13 = scmp.lt.s32.totalorder %s738_s14, %s731_s13 }
  0x35   : > { %p741_p11 = por %p740_p13, %p739_p12 }
  0x37   : > { %p742_p3 = pnand %p741_p11, %p735_p9 }
  0x39   : > { %745 = shalt.err (!%p742_p3)
}
  0x3a   : > { %625 = dma.hbm_to_vmem [thread:$0]  (!%p1002_p5), %s230_s9, 128, %s233_s11, %s221_s3  }
  0x3b   : > { %s579_s6 = sshll.u32 %s858_s22, 4  ;;  %s242_s8 = scalar_lea.vmem [#allocation5], %s220_s17 }
  0x3c   : > { %s249_s10 = sshll.u32 %s242_s8, 4  ;;  %s247_s29 = scalar_lea.hbm %s1108_s1, %s579_s6  ;;  %s250_s10 = int_to_ptr.vmem [resolvable:$true] %s249_s10 }
  0x3d   : > { %s240_s25 = scalar_lea.sflag [#allocation6], %s239_s16  ;;  %s759_s20 = scalar_lea.vmem %s250_s10, 16 }
  0x3e   : > { %p760_p2 = scmp.ne.s32.totalorder %s250_s10, %s759_s20  ;;  %s868_s13 = smov [#allocation5]  }
  0x3f   : > { %s764_s30 = sshll.u32 %s868_s13, 4  ;;  %s765_s30 = int_to_ptr.vmem [resolvable:$false] %s764_s30 }
  0x40   : > { %p762_p6 = pnand %p760_p2, %p720_p7  ;;  %s766_s14 = scalar_lea.vmem %s765_s30, 32 }
  0x41   : > { %p767_p12 = scmp.lt.s32.totalorder %s250_s10, %s765_s30  ;;  %p768_p13 = scmp.lt.s32.totalorder %s766_s14, %s759_s20 }
  0x42   : > { %p763_p9 = pneg %p762_p6 }
  0x43   : > { %p769_p11 = por %p768_p13, %p767_p12 }
  0x45   : > { %p770_p3 = pnand %p769_p11, %p763_p9 }
  0x47   : > { %773 = shalt.err (!%p770_p3)
}
  0x48   : > { %628 = dma.hbm_to_vmem [thread:$0]  (!%p1002_p5), %s247_s29, 16, %s250_s10, %s240_s25  }
  0x49   : > { %264 = sbr.rel (%p952_p8) target bundleno = 464 (0x1d0), region = 40  ;;  %s1026_s0 = sand.u32 (!%p952_p8), 1, %s846_s19  }
  0x4a   : > { %s581_s3 = sshll.u32 (!%p952_p8), %s1026_s0, 3  ;;  %s267_s7 = scalar_lea.sflag (!%p952_p8), [#allocation3], %s1026_s0 }
  0x4b   : > { %s270_s20 = scalar_lea.vmem (!%p952_p8), [#allocation2], %s581_s3 }
  0x4e   : > { %825 = dma.done.wait (%p942_p4), %s267_s7, 128  }
  0x4f   : > { %827 = vsyncadd (%p942_p4), %s267_s7, 4294967168  ;;  %s275_s28 = sand.u32 1, %s933_s24   ;;  %s278_s29 = scalar_lea.vmem [#allocation5], %s1026_s0 }
  0x50   : > { %s276_s17 = scalar_lea.sflag [#allocation6], %s275_s28 }
  0x51   : > { %829 = dma.done.wait (%p942_p4), %s276_s17, 16  }
  0x52   : > { %831 = vsyncadd (%p942_p4), %s276_s17, 4294967280 }
  0x53   : > { %833 = dma.done.wait (%p59_p1), [#allocation6], 512  }
  0x54   : > { %835 = vsyncadd (%p59_p1), [#allocation6], 4294966784  ;;  %vm320_vm0 = vcmask 261120   ;;  %v319_v0 = vld [vmem:[%s270_s20] sm:$0xff]  ;;  %v869_v5 = vmov 0.0   ;;  %vm870_vm1 = vmmov 0  }
  0x55   : > { %v321_v1 = vsel %vm320_vm0, %v319_v0, 0.0  ;;  %v325_v2 = vmul.f32 %v319_v0, %v319_v0  ;;  %v356_v4 = vld [vmem:[#allocation7 + $0x18] sm:$0xff]  ;;  %597 = vmatprep.subr.mxu0 %v869_v5  ;;  %v355_v6 = vld [vmem:[#allocation7 + $0x10] sm:$0xff]  ;;  %605 = vmatprep.mubr.msk.f32.mxu0 %vm870_vm1, %v869_v5  ;;  %v354_v7 = vld [vmem:[#allocation7 + $0x8] sm:$0xff]  ;;  %p316_p1 = scmp.lt.s32.totalorder %s854_s21, 1  ;;  %s589_s6 = sshll.u32 %s854_s21, 7 }
  0x56   : > { %322 = vadd.xlane.f32.xlu0 %v321_v1  ;;  %598 = vmatpush3.msra.mxu0 %v356_v4  ;;  %v353_v8 = vld [vmem:[#allocation7] sm:$0xff]  ;;  %v585_v19 = vld [vmem:[%s278_s29] ss:$0 sm:$0xff]  ;;  %s315_s8 = scalar_lea.vmem [#allocation8], %s581_s3  ;;  %vm437_vm2 = vcmask 130048   ;;  %s1065_s30 = scalar_lea.hbm %s1112_s5, %s589_s6 }
  0x57   : > { %v326_v3 = vsel %vm320_vm0, %v325_v2, 0.0  ;;  %599 = vmatprep.subr.mxu0 %v869_v5  ;;  %s317_s24 = scalar_select %p316_p1, %s854_s21, 1  ;;  %v586_v24 = vld [vmem:[%s1111_s4] ss:$0 sm:$0xff] }
  0x58   : > { %600 = vmatpush3.msra.mxu0 %v355_v6  ;;  %s454_s10 = sshll.u32 %s315_s8, 4  ;;  %s440_s14 = scalar_lea.sflag [#allocation4], %s1026_s0  ;;  %s455_s10 = int_to_ptr.vmem [resolvable:$true] %s454_s10 }
  0x59   : > { %601 = vmatprep.subr.mxu0 %v869_v5  ;;  %s318_s11 = scalar_lea.vmem %s1109_s2, %s317_s24  ;;  %s774_s7 = scalar_lea.vmem %s455_s10, 128 }
  0x5a   : > { %327 = vadd.xlane.f32.xlu0 %v326_v3  ;;  %602 = vmatpush3.msra.mxu0 %v354_v7  ;;  %v584_v16 = vld [vmem:[%s318_s11] ss:$0 sm:$0xff]  ;;  %p775_p4 = scmp.ne.s32.totalorder %s455_s10, %s774_s7  ;;  %s871_s21 = smov [#allocation8]  }
  0x5b   : > { %603 = vmatprep.subr.mxu0 %v869_v5  ;;  %s778_s3 = sshll.u32 %s871_s21, 4  ;;  %s779_s3 = int_to_ptr.vmem [resolvable:$false] %s778_s3 }
  0x5c   : > { %604 = vmatpush3.msra.mxu0 %v353_v8  ;;  %p776_p8 = pnand %p775_p4, %p985_p0  ;;  %s780_s20 = scalar_lea.vmem %s779_s3, 256 }
  0x5d   : > { %p781_p7 = scmp.lt.s32.totalorder %s455_s10, %s779_s3  ;;  %p782_p2 = scmp.lt.s32.totalorder %s780_s20, %s774_s7 }
  0x5e   : > { %p777_p5 = pneg %p776_p8 }
  0x5f   : > { %p783_p6 = por %p782_p2, %p781_p7 }
  0x61   : > { %p784_p9 = pnand %p783_p6, %p777_p5 }
  0xdf   : > { %v323_v9 = vpop.xlane.xlu0 %322 }
  0xe0   : > { %v324_v10 = vmul.f32 0.03125, %v323_v9 }
  0xe2   : > { %v330_v12 = vmul.f32 %v324_v10, %v324_v10 }
  0xe3   : > { %v328_v11 = vpop.xlane.xlu0 %327 }
  0xe4   : > { %v329_v13 = vmul.f32 0.03125, %v328_v11 }
  0xe6   : > { %v331_v14 = vsub.f32 %v329_v13, %v330_v12 }
  0xe8   : > { %v332_v15 = vadd.f32 1e-06, %v331_v14 }
  0xea   : > { %690 = vrsqrt.f32 %v332_v15 }
  0xf7   : > { %v691_v17 = vpop.eup %690 }
  0xf8   : > { %v341_v18 = vmul.f32 %v691_v17, %v584_v16 }
  0xfa   : > { %v343_v20 = vmul.f32 %v341_v18, %v324_v10  ;;  %v351_v22 = vmul.f32 %v341_v18, %v319_v0 }
  0xfc   : > { %v350_v21 = vsub.f32 %v585_v19, %v343_v20 }
  0xfe   : > { %v352_v23 = vadd.f32 %v351_v22, %v350_v21 }
 0x100   : > { %606 = vmatmul.mubr.msk.f32.vlgmr.msra.gmra.mxu0 %vm320_vm0, %v352_v23 }
 0x1c0   : > { %v433_v25 = vpop.f32.mrf.mxu0 }
 0x1c1   : > { %v434_v26 = vadd.f32 %v586_v24, %v433_v25 }
 0x1c2   : > { %v607_v27 = vpop.f32.mrf.mxu0 }
 0x1c3   : > { %438 = vst.msk [vmem:[%s315_s8] sm:$0xff] %vm437_vm2, %v434_v26 }
 0x1c4   : > { %787 = shalt.err (!%p784_p9)
}
 0x1c5   : > { %s788_s28 = scalar_lea.hbm %s1065_s30, 128  ;;  %s792_s29 = scalar_lea.hbm %s1112_s5, 256 }
 0x1c6   : > { %p789_p12 = scmp.ne.s32.totalorder %s1065_s30, %s788_s28  ;;  %p793_p3 = scmp.lt.s32.totalorder %s1065_s30, %s1112_s5 }
 0x1c7   : > { %p794_p1 = scmp.lt.s32.totalorder %s792_s29, %s788_s28 }
 0x1c8   : > { %p790_p13 = pnand %p789_p12, %p985_p0 }
 0x1c9   : > { %p795_p4 = por %p794_p1, %p793_p3 }
 0x1ca   : > { %p791_p11 = pneg %p790_p13 }
 0x1cc   : > { %p796_p8 = pnand %p795_p4, %p791_p11 }
 0x1ce   : > { %799 = shalt.err (!%p796_p8)
}
 0x1cf   : > { %616 = dma.vmem_to_hbm [thread:$0]  (%p985_p0), %s455_s10, 128, %s1065_s30, %s440_s14  }
 0x1d0 PF: > { %s466_s9 = sand.u32 1, %s842_s18   ;;  %p1130_p5 = scmp.ne.s32.totalorder %s1119_s27, 0 }
 0x1d1   : > { %s467_s11 = scalar_lea.sflag [#allocation4], %s466_s9 }
 0x1d2   : > { %p630_p7 = pnand %p576_p10, %p1130_p5 }
 0x1d4   : > { %p631_p2 = pneg %p630_p7 }
 0x1d6   : > { %837 = dma.done.wait (%p631_p2), %s467_s11, 128  }
 0x1d7   : > { %839 = vsyncadd (%p631_p2), %s467_s11, 4294967168  ;;  %s24_s23 = sadd.s32 1, %s862_s23   ;;  %s1131_s12 = sld [smem:[#allocation13_spill]] }
 0x1d8   : > { %p21_p6 = scmp.ge.s32.totalorder %s24_s23, 4   ;;  %s1132_s20 = sld [smem:[#allocation15_spill]] }
 0x1d9   : > { %s1133_s15 = sld [smem:[#allocation14_spill]]  ;;  %s1134_s18 = smov %s846_s19 }
 0x1da   : > { %s1136_s21 = smov %s858_s22 }
 0x1db   :  { %23 = sbr.rel (!%p21_p6) target bundleno = 11 (0xb), region = 105 }
 0x1dd   : > { %s1135_s19 = smov %s1131_s12 }
 0x1df   : > { %s1137_s22 = smov %s1133_s15 }
 0x1e0   :  { %472 = vsyncpa [#allocation3], 1 }
 0x1e1   :  { %474 = vsyncpa [#allocation3 + $0x1], 1 }
 0x1e2   :  { %475 = vsyncpa [#allocation6], 1 }
 0x1e3   :  { %477 = vsyncpa [#allocation6 + $0x1], 1 }
 0x1e4   :  { %478 = vsyncpa [#allocation4], 1 }
 0x1e5   :  { %480 = vsyncpa [#allocation4 + $0x1], 1 }

</bundles_post_ra>
